<compile_context>
chip_gen: v7x
topology: tpu7x:2x2x1
jax: 0.10.0
libtpu: 0.0.40
codegen_flags: <defaults>
</compile_context>

<pallas_src>
import functools
import math

import jax
import jax.numpy as jnp
from jax.experimental import pallas as pl
from jax.experimental.pallas import tpu as pltpu


# ---------------------------------------------------------------------------
# Pallas kernel: trunk hidden layers + folded final layer, feature-major.
# refs = [x (Din, tp)-block,
#         (W^T, b_col) per hidden layer (resident),
#         w_eff (1, O, K) per-batch, b_eff (1, O, 1) per-batch,
#         out (1, O, tp)]
# ---------------------------------------------------------------------------
def _trunk_kernel(x_ref, *refs, num_hidden):
    idx = 0
    layers = []
    for _ in range(num_hidden):
        layers.append((refs[idx], refs[idx + 1]))
        idx += 2
    w_eff_ref, b_eff_ref, out_ref = refs[idx], refs[idx + 1], refs[idx + 2]

    cd = w_eff_ref.dtype                       # compute dtype (pre-cast at trace time)

    x = x_ref[0]                               # (Din, tp), already in cd
    for (w_ref, b_ref) in layers:              # Linear + ReLU, feature-major
        y = jnp.dot(w_ref[...], x, preferred_element_type=jnp.float32) + b_ref[...]
        x = jnp.maximum(y, 0.0).astype(cd)     # no-op cast in the f32 path

    # Folded last layer: (O, K) @ (K, tp) + (O, 1) -> lane-dense (O, tp).
    out = jnp.dot(w_eff_ref[0], x, preferred_element_type=jnp.float32) + b_eff_ref[0]
    out_ref[0] = out.astype(out_ref.dtype)


def _pick_tile_p(B, P, tile_p):
    """Large tiles amortize the ~0.35us/step overhead.  tp must be a multiple
    of 128 (lane-dense output store / (8,128) rule) or equal to P.  Keep the
    grid >= 2 steps when B == 1 so both v7x TensorCores get work."""
    P = int(P)
    tp = min(int(tile_p), P)
    if B == 1 and tp >= P and P > 1:
        tp = -(-P // 2)                        # ceil(P/2)
    if tp >= P:
        return P
    tp = (tp // 128) * 128
    return P if tp <= 0 else tp


def pallas_mimonet_trunk(x_fm, hidden_wt, w_eff, b_eff, *, tile_p):
    """x_fm: (B, Din, P) feature-major trunk input.
    hidden_wt: list of (W^T (Dout, Din), b (Dout, 1)).
    w_eff: (B, O, K) per-batch effective last layer; b_eff: (B, O, 1)."""
    B, Din, P = x_fm.shape
    _, O, K = w_eff.shape
    tp = _pick_tile_p(B, P, tile_p)
    grid = (B, pl.cdiv(P, tp))

    in_specs = [pl.BlockSpec((1, Din, tp), lambda b, p: (b, 0, p))]
    args = [x_fm]
    for (wt, bcol) in hidden_wt:               # small weights: fully resident
        in_specs += [pl.BlockSpec(wt.shape, lambda b, p: (0, 0)),
                     pl.BlockSpec(bcol.shape, lambda b, p: (0, 0))]
        args += [wt, bcol]
    in_specs += [pl.BlockSpec((1, O, K), lambda b, p: (b, 0, 0)),
                 pl.BlockSpec((1, O, 1), lambda b, p: (b, 0, 0))]
    args += [w_eff, b_eff]

    return pl.pallas_call(
        functools.partial(_trunk_kernel, num_hidden=len(hidden_wt)),
        out_shape=jax.ShapeDtypeStruct((B, O, P), jnp.float32),
        grid=grid,
        in_specs=in_specs,
        out_specs=pl.BlockSpec((1, O, tp), lambda b, p: (b, 0, p)),
        compiler_params=pltpu.CompilerParams(
            dimension_semantics=("parallel", "parallel")),
    )(*args)


# ---------------------------------------------------------------------------
# FCN parameter init (matches torch.nn.Linear default init range)
# ---------------------------------------------------------------------------
def init_fcn(key, arch):
    params = []
    for i in range(len(arch) - 1):
        key, kw, kb = jax.random.split(key, 3)
        bound = 1.0 / math.sqrt(arch[i])
        w = jax.random.uniform(kw, (arch[i], arch[i + 1]), jnp.float32, -bound, bound)
        b = jax.random.uniform(kb, (arch[i + 1],), jnp.float32, -bound, bound)
        params.append((w, b))
    return params


def _fcn_xla(params, x):
    n = len(params)
    for i, (w, b) in enumerate(params):
        x = x @ w + b
        if i < n - 1:
            x = jnp.maximum(x, 0.0)
    return x


# ---------------------------------------------------------------------------
# MIMONet forward: 1 pallas_call total.
# ---------------------------------------------------------------------------
def mimonet_forward(params, branch_inputs, trunk_input, *, num_outputs,
                    merge_type='mul', compute_dtype=jnp.float32, tile_p=2048):
    branch_params, trunk_params, bias = params
    B, P, Din = trunk_input.shape
    O = num_outputs

    # --- branch MLPs + merge: trivial FLOPs -> plain XLA (no extra pallas launch).
    bouts = [_fcn_xla(p, x) for p, x in zip(branch_params, branch_inputs)]
    combined = bouts[0]
    for bo in bouts[1:]:
        combined = combined * bo if merge_type == 'mul' else combined + bo

    # --- fold the merged branch vector into the trunk's last Linear layer (XLA,
    #     fused with the branch ops; result is ~B*K*O floats):
    #     w_eff[b,o,k] = sum_h combined[b,h] * W_last[k, h*O+o]
    #     b_eff[b,o]   = sum_h combined[b,h] * b_last[h*O+o] + bias[o]
    W_last, b_last = trunk_params[-1]                      # (K, H*O), (H*O,)
    K, HO = W_last.shape
    H = HO // O
    w_fold = W_last.reshape(K, H, O).transpose(1, 2, 0)    # (H, O, K)  [trace-time]
    w_eff = jnp.einsum('bh,hok->bok', combined, w_fold)    # (B, O, K)
    b_eff = (combined @ b_last.reshape(H, O) + bias.reshape(1, O)).reshape(B, O, 1)

    # --- feature-major layout so the point axis lands on the 128 lanes.
    x_fm = jnp.transpose(trunk_input, (0, 2, 1))           # (B, Din, P)
    hidden = [(w.T, b.reshape(-1, 1)) for (w, b) in trunk_params[:-1]]

    # --- bf16 MXU-input path: pre-cast at trace time so the HBM->VMEM DMA is
    #     half-width and the kernel does no casts of DMA'd data (biases stay f32).
    if compute_dtype != jnp.float32:
        x_fm = x_fm.astype(compute_dtype)
        w_eff = w_eff.astype(compute_dtype)
        hidden = [(wt.astype(compute_dtype), bc) for (wt, bc) in hidden]

    out_op = pallas_mimonet_trunk(x_fm, hidden, w_eff, b_eff, tile_p=tile_p)   # (B, O, P)
    return jnp.transpose(out_op, (0, 2, 1))                # (B, P, O) — module layout


# ---------------------------------------------------------------------------
# Pure-JAX reference (mirrors the PyTorch forward)
# ---------------------------------------------------------------------------
def ref_forward(params, branch_inputs, trunk_input, num_outputs, merge_type='mul'):
    branch_params, trunk_params, bias = params
    bouts = [_fcn_xla(p, x) for p, x in zip(branch_params, branch_inputs)]
    combined = bouts[0]
    for bo in bouts[1:]:
        combined = combined * bo if merge_type == 'mul' else combined + bo
    B, P, D = trunk_input.shape
    to = _fcn_xla(trunk_params, trunk_input.reshape(B * P, D)).reshape(B, P, -1, num_outputs)
    return jnp.einsum('bi,bpio->bpo', combined, to) + bias


# ---------------------------------------------------------------------------
if __name__ == "__main__":
    key = jax.random.PRNGKey(0)
    num_outputs = 2
    hidden_dim = 32
    branch_arch_list = [[6, 32, hidden_dim], [10, 32, hidden_dim]]
    trunk_arch = [3, 32, hidden_dim * num_outputs]   # trunk_arch[-1] = hidden_dim * num_outputs

    k1, k2, k3, k4, k5, k6, k7 = jax.random.split(key, 7)
    branch_params = [init_fcn(k1, branch_arch_list[0]),
                     init_fcn(k2, branch_arch_list[1])]
    trunk_params = init_fcn(k3, trunk_arch)
    bias = jnp.zeros((1, 1, num_outputs), jnp.float32)   # nn.Parameter(torch.zeros(1,1,O))
    params = (branch_params, trunk_params, bias)

    B, P = 2, 8
    branch_inputs = [
        jax.random.normal(k4, (B, branch_arch_list[0][0]), jnp.float32),
        jax.random.normal(k5, (B, branch_arch_list[1][0]), jnp.float32),
    ]
    trunk_input = jax.random.normal(k6, (B, P, trunk_arch[0]), jnp.float32)

    fwd = jax.jit(mimonet_forward,
                  static_argnames=('num_outputs', 'merge_type', 'compute_dtype', 'tile_p'))

    # f32, merge_type='mul'
    out = jax.block_until_ready(
        fwd(params, branch_inputs, trunk_input, num_outputs=num_outputs, merge_type='mul'))
    ref = ref_forward(params, branch_inputs, trunk_input, num_outputs, 'mul')
    assert out.shape == (B, P, num_outputs)
    assert jnp.allclose(out, ref, atol=1e-4, rtol=1e-4)

    # f32, merge_type='sum'
    out_sum = jax.block_until_ready(
        fwd(params, branch_inputs, trunk_input, num_outputs=num_outputs, merge_type='sum'))
    ref_sum = ref_forward(params, branch_inputs, trunk_input, num_outputs, 'sum')
    assert jnp.allclose(out_sum, ref_sum, atol=1e-4, rtol=1e-4)

    # Non-divisible P (partial last tile) with a lane-dense 128-wide P tile.
    P2 = 136
    trunk_input2 = jax.random.normal(k7, (B, P2, trunk_arch[0]), jnp.float32)
    out2 = jax.block_until_ready(
        fwd(params, branch_inputs, trunk_input2, num_outputs=num_outputs,
            merge_type='mul', tile_p=128))
    ref2 = ref_forward(params, branch_inputs, trunk_input2, num_outputs, 'mul')
    assert out2.shape == (B, P2, num_outputs)
    assert jnp.allclose(out2, ref2, atol=1e-4, rtol=1e-4)

    # bf16 MXU-input path (weights/input pre-cast at trace time, f32 accumulation).
    out_bf16 = jax.block_until_ready(
        fwd(params, branch_inputs, trunk_input, num_outputs=num_outputs,
            merge_type='mul', compute_dtype=jnp.bfloat16))
    assert bool(jnp.all(jnp.isfinite(out_bf16)))
    assert jnp.allclose(out_bf16, ref, atol=1e-1, rtol=1e-1)

    print("KERNEL_OK")
</pallas_src>

<mosaic_0001>
module attributes {stable_mosaic.version = 11 : i64} {
  func.func @_trunk_kernel(%arg0: i32, %arg1: i32, %arg2: memref<1x3x8xf32, #tpu.memory_space<vmem>>, %arg3: memref<32x3xf32, #tpu.memory_space<vmem>>, %arg4: memref<32x1xf32, #tpu.memory_space<vmem>>, %arg5: memref<1x2x32xf32, #tpu.memory_space<vmem>>, %arg6: memref<1x2x1xf32, #tpu.memory_space<vmem>>, %arg7: memref<1x2x8xf32, #tpu.memory_space<vmem>>) attributes {dimension_semantics = [#tpu.dimension_semantics<parallel>, #tpu.dimension_semantics<parallel>], iteration_bounds = array<i64: 2, 1>, scalar_prefetch = 0 : i64, scratch_operands = 0 : i64, tpu.core_type = #tpu.core_type<tc>, window_params = [{transform_indices = @transform_0, window_bounds = array<i64: 1, 3, 8>}, {pipeline_mode = #tpu.pipeline_mode<synchronous>, transform_indices = @transform_1, window_bounds = array<i64: 32, 3>}, {pipeline_mode = #tpu.pipeline_mode<synchronous>, transform_indices = @transform_2, window_bounds = array<i64: 32, 1>}, {transform_indices = @transform_3, window_bounds = array<i64: 1, 2, 32>}, {transform_indices = @transform_4, window_bounds = array<i64: 1, 2, 1>}, {transform_indices = @transform_5, window_bounds = array<i64: 1, 2, 8>}]} {
    %c0 = arith.constant 0 : index
    %c0_0 = arith.constant 0 : index
    %c0_1 = arith.constant 0 : index
    %0 = vector.load %arg2[%c0, %c0_0, %c0_1] : memref<1x3x8xf32, #tpu.memory_space<vmem>>, vector<1x3x8xf32>
    %1 = vector.shape_cast %0 : vector<1x3x8xf32> to vector<3x8xf32>
    %c0_2 = arith.constant 0 : index
    %c0_3 = arith.constant 0 : index
    %2 = vector.load %arg3[%c0_2, %c0_3] : memref<32x3xf32, #tpu.memory_space<vmem>>, vector<32x3xf32>
    %cst = arith.constant dense<0.000000e+00> : vector<32x8xf32>
    %3 = tpu.matmul %2, %1, %cst {dimension_numbers = #tpu.dot_dimension_numbers<[1], [0], [0], [1], [0, 0, 1, 1], [], []>} : vector<32x3xf32>, vector<3x8xf32>, vector<32x8xf32> -> vector<32x8xf32>
    %c0_4 = arith.constant 0 : index
    %c0_5 = arith.constant 0 : index
    %4 = vector.load %arg4[%c0_4, %c0_5] : memref<32x1xf32, #tpu.memory_space<vmem>>, vector<32x1xf32>
    %5 = vector.broadcast %4 : vector<32x1xf32> to vector<32x8xf32>
    %6 = arith.addf %3, %5 : vector<32x8xf32>
    %cst_6 = arith.constant 0.000000e+00 : f32
    %7 = vector.broadcast %cst_6 : f32 to vector<32x8xf32>
    %8 = arith.maximumf %6, %7 : vector<32x8xf32>
    %c0_7 = arith.constant 0 : index
    %c0_8 = arith.constant 0 : index
    %c0_9 = arith.constant 0 : index
    %9 = vector.load %arg5[%c0_7, %c0_8, %c0_9] : memref<1x2x32xf32, #tpu.memory_space<vmem>>, vector<1x2x32xf32>
    %10 = vector.shape_cast %9 : vector<1x2x32xf32> to vector<2x32xf32>
    %cst_10 = arith.constant dense<0.000000e+00> : vector<2x8xf32>
    %11 = tpu.matmul %10, %8, %cst_10 {dimension_numbers = #tpu.dot_dimension_numbers<[1], [0], [0], [1], [0, 0, 1, 1], [], []>} : vector<2x32xf32>, vector<32x8xf32>, vector<2x8xf32> -> vector<2x8xf32>
    %c0_11 = arith.constant 0 : index
    %c0_12 = arith.constant 0 : index
    %c0_13 = arith.constant 0 : index
    %12 = vector.load %arg6[%c0_11, %c0_12, %c0_13] : memref<1x2x1xf32, #tpu.memory_space<vmem>>, vector<1x2x1xf32>
    %13 = vector.shape_cast %12 : vector<1x2x1xf32> to vector<2x1xf32>
    %14 = vector.broadcast %13 : vector<2x1xf32> to vector<2x8xf32>
    %15 = arith.addf %11, %14 : vector<2x8xf32>
    %c0_14 = arith.constant 0 : index
    %c0_15 = arith.constant 0 : index
    %c0_16 = arith.constant 0 : index
    %16 = vector.load %arg7[%c0_14, %c0_15, %c0_16] : memref<1x2x8xf32, #tpu.memory_space<vmem>>, vector<1x2x8xf32>
    %17 = vector.shape_cast %16 : vector<1x2x8xf32> to vector<2x8xf32>
    %18 = vector.shape_cast %15 : vector<2x8xf32> to vector<1x2x8xf32>
    tpu.vector_store %arg7[%c0_14, %c0_15, %c0_16], %18 {strides = array<i32>} : memref<1x2x8xf32, #tpu.memory_space<vmem>>, vector<1x2x8xf32>,
    return
  }
  func.func @transform_0(%arg0: i32, %arg1: i32) -> (i32, i32, i32) {
    %c0_i32 = arith.constant 0 : i32
    %c0_i32_0 = arith.constant 0 : i32
    return %arg0, %c0_i32, %arg1 : i32, i32, i32
  }
  func.func @transform_1(%arg0: i32, %arg1: i32) -> (i32, i32) {
    %c0_i32 = arith.constant 0 : i32
    %c0_i32_0 = arith.constant 0 : i32
    %c0_i32_1 = arith.constant 0 : i32
    return %c0_i32, %c0_i32_0 : i32, i32
  }
  func.func @transform_2(%arg0: i32, %arg1: i32) -> (i32, i32) {
    %c0_i32 = arith.constant 0 : i32
    %c0_i32_0 = arith.constant 0 : i32
    %c0_i32_1 = arith.constant 0 : i32
    return %c0_i32, %c0_i32_0 : i32, i32
  }
  func.func @transform_3(%arg0: i32, %arg1: i32) -> (i32, i32, i32) {
    %c0_i32 = arith.constant 0 : i32
    %c0_i32_0 = arith.constant 0 : i32
    %c0_i32_1 = arith.constant 0 : i32
    return %arg0, %c0_i32, %c0_i32_0 : i32, i32, i32
  }
  func.func @transform_4(%arg0: i32, %arg1: i32) -> (i32, i32, i32) {
    %c0_i32 = arith.constant 0 : i32
    %c0_i32_0 = arith.constant 0 : i32
    %c0_i32_1 = arith.constant 0 : i32
    return %arg0, %c0_i32, %c0_i32_0 : i32, i32, i32
  }
  func.func @transform_5(%arg0: i32, %arg1: i32) -> (i32, i32, i32) {
    %c0_i32 = arith.constant 0 : i32
    %c0_i32_0 = arith.constant 0 : i32
    return %arg0, %c0_i32, %arg1 : i32, i32, i32
  }
}

</mosaic_0001>

<bundles_post_ra>
// kernel: mimonet_forward.1
= control target key start
LH: loop header
LB: loop body
LE: loop exit
PB: predicated region body
PF: predicated region fallthrough
CT: control target
= control target key end

     0   :  { %10 = vsyncpa [#allocation3], 0  ;;  %s991_s0 = inlined_call_operand.vmem [shape: f32[2,3,8], index: 0, kind: input, shape index: {}]   ;;  %s992_s1 = inlined_call_operand.vmem [shape: f32[32,3], index: 1, kind: input, shape index: {}]   ;;  %s993_s2 = inlined_call_operand.vmem [shape: f32[32,1], index: 2, kind: input, shape index: {}]   ;;  %s994_s3 = inlined_call_operand.vmem [shape: f32[2,2,32], index: 3, kind: input, shape index: {}]   ;;  %s995_s4 = inlined_call_operand.vmem [shape: f32[2,2,1], index: 4, kind: input, shape index: {}]   ;;  %s996_s5 = inlined_call_operand.hbm [shape: f32[2,2,8], index: 5, kind: output, shape index: {}]  }
   0x1   :  { %12 = vsyncpa [#allocation3 + $0x1], 0  ;;  %s837_s18 = smov 0   ;;  %s839_s19 = smov 0  }
   0x2   :  { %s841_s20 = smov 0   ;;  %s843_s21 = smov 0  }
   0x3   :  { %s845_s22 = smov 0   ;;  %s847_s23 = smov 0  }
   0x4 LB: > { %s607_s24 = sadd.s32 4294967295, %s800_s23   ;;  %s608_s25 = sadd.s32 4294967294, %s800_s23   ;;  %s800_s23 = sphi %s847_s23, %s18_s23   ;;  %s796_s22 = sphi %s845_s22, %s1003_s22   ;;  %s792_s21 = sphi %s843_s21, %s1002_s21   ;;  %s788_s20 = sphi %s841_s20, %s1001_s20   ;;  %s784_s19 = sphi %s839_s19, %s1000_s19   ;;  %s780_s18 = sphi %s837_s18, %s999_s18  }
   0x5   : > { %s30_s26 = sadd.s32 1, %s796_s22  ;;  %s161_s27 = sadd.s32 1, %s788_s20 }
   0x6   : > { %p32_p0 = scmp.ge.s32.totalorder %s30_s26, 2  ;;  %p171_p1 = scmp.ne.s32.totalorder %s788_s20, %s784_s19 }
   0x7   : > { %p172_p2 = scmp.eq.s32.totalorder %s607_s24, 1  ;;  %p177_p3 = scmp.ne.s32.totalorder %s784_s19, %s780_s18 }
   0x8   : > { %s1005_s26 = smov (%p32_p0, %s30_s26), 0  ;;  %p178_p5 = scmp.eq.s32.totalorder %s608_s25, 1 }
   0x9   : > { %p877_p4 = por %p172_p2, %p171_p1  ;;  %s156_s29 = ssub.s32 %s796_s22, %s1005_s26 }
   0xa   : > { %p611_p6 = scmp.ge.s32.totalorder %s800_s23, 1  ;;  %p159_p7 = scmp.eq.s32.totalorder %s156_s29, 0 }
   0xb   : > { %p884_p8 = por %p178_p5, %p177_p3  ;;  %p226_p9 = scmp.lt.s32.totalorder %s800_s23, 3 }
   0xc   : > { %s890_s6 = scalar_select %p159_p7, %s788_s20, %s161_s27  }
   0xd   : > { %p227_p10 = pnand %p611_p6, %p226_p9 }
   0xe   : > { %p264_p11 = scmp.lt.s32.totalorder (!%p227_p10), %s792_s21, 1  ;;  %v280_v0 = vld [vmem:[%s992_s1] sm:$0xff] (!%p227_p10)  ;;  %vm308_vm0 = vcmask (!%p227_p10), 23552   ;;  %v802_v2 = vmov (!%p227_p10), 0   ;;  %v286_v3 = vld [vmem:[%s993_s2 + $0x10] sm:$0xff] (!%p227_p10)  ;;  %vm321_vm1 = vcmask (!%p227_p10), 1042432  }
   0xf   : > { %230 = sbr.rel (%p227_p10) target bundleno = 483 (0x1e3), region = 40  ;;  %638 = vmatprep.mubr.msk.f32.mxu0 (!%p227_p10), %vm308_vm0, %v280_v0  ;;  %v284_v1 = vld [vmem:[%s993_s2] sm:$0xff] (!%p227_p10)  ;;  %720 = vset.pattern.permute.xlu0 (!%p227_p10), %v802_v2  ;;  %v285_v4 = vld [vmem:[%s993_s2 + $0x8] sm:$0xff] (!%p227_p10)  ;;  %v287_v5 = vld [vmem:[%s993_s2 + $0x18] sm:$0xff] (!%p227_p10)  ;;  %v803_v11 = vmov (!%p227_p10), 0.0|0.0   ;;  %vm804_vm2 = vmmov (!%p227_p10), 0  }
  0x10   : > { %721 = vset.pattern.permute.xlu1 (!%p227_p10), %v802_v2  ;;  %290 = vperm.xlu0 (!%p227_p10), %720, %v284_v1   ;;  %v281_v7 = vld [vmem:[%s992_s1 + $0x8] sm:$0xff] (!%p227_p10)  ;;  %v282_v8 = vld [vmem:[%s992_s1 + $0x10] sm:$0xff] (!%p227_p10)  ;;  %v283_v10 = vld [vmem:[%s992_s1 + $0x18] sm:$0xff] (!%p227_p10)  ;;  %v805_v12 = vmov (!%p227_p10), 0.0   ;;  %vm421_vm3 = vcmask (!%p227_p10), 261120   ;;  %s261_s7 = sand.u32 (!%p227_p10), 1, %s784_s19  }
  0x11   : > { %300 = vperm.xlu1 (!%p227_p10), %721, %v286_v3   ;;  %655 = vmatprep.subr.bf16.mxu1 (!%p227_p10), %v803_v11  ;;  %s623_s9 = sshll.u32 (!%p227_p10), %s792_s21, 5  ;;  %vm495_vm4 = vcmask (!%p227_p10), 58368   ;;  %s498_s15 = scalar_lea.sflag (!%p227_p10), [#allocation3], %s261_s7 }
  0x12   : > { %652 = vmatprep.mubr.msk.f32.mxu1 (!%p227_p10), %vm804_vm2, %v805_v12  ;;  %s806_s16 = smov (!%p227_p10), [#allocation2]  }
  0x14   : > { %295 = vperm.xlu0 (!%p227_p10), %720, %v285_v4  }
  0x15   : > { %305 = vperm.xlu1 (!%p227_p10), %721, %v287_v5  }
  0x16   : > { %s901_s11 = scalar_select %p264_p11, %s792_s21, 1 }
  0x18   : > { %s613_s14 = sshll.u32 %s901_s11, 2  ;;  %s614_s17 = sshll.u32 %s901_s11, 1 }
  0x19   : > { %s270_s27 = scalar_lea.vmem %s991_s0, %s613_s14  ;;  %s278_s8 = scalar_lea.vmem %s995_s4, %s614_s17 }
  0x1a   : > { %v279_v6 = vld [vmem:[%s270_s27] sm:$0x7]  ;;  %s274_s29 = scalar_lea.vmem %s994_s3, %s614_s17  ;;  %s944_s17 = scalar_lea.hbm %s996_s5, %s623_s9 }
  0x1b   : > { %636 = vmatprep.subr.msk.mxu0 %vm321_vm1, %v279_v6  ;;  %v415_v9 = vld [vmem:[%s278_s8] sm:$0x3]  ;;  %s612_s8 = sshll.u32 %s261_s7, 1  ;;  %s726_s14 = sshll.u32 %s806_s16, 4  ;;  %s727_s14 = int_to_ptr.vmem [resolvable:$false] %s726_s14 }
  0x1c   : > { %637 = vmatpush3.msk.msra.mxu0 %vm321_vm1, %v279_v6  ;;  %418 = vperm.xlu0 %720, %v415_v9   ;;  %v414_v31 = vld [vmem:[%s274_s29] sm:$0x3]  ;;  %s263_s10 = scalar_lea.vmem [#allocation2], %s612_s8  ;;  %s728_s24 = scalar_lea.vmem %s727_s14, 64 }
  0x1d   : > { %639 = vmatmul.mubr.msk.f32.vlgmr.msra.gmra.mrb[0].mxu0 %vm308_vm0, %v281_v7  ;;  %s512_s12 = sshll.u32 %s263_s10, 4  ;;  %s946_s12 = int_to_ptr.vmem [resolvable:$true] %s512_s12 }
  0x1e   : > { %641 = vmatprep.mubr.msk.f32.mxu0 %vm308_vm0, %v282_v8  ;;  %s722_s21 = scalar_lea.vmem %s946_s12, 32  ;;  %p729_p1 = scmp.lt.s32.totalorder %s946_s12, %s727_s14 }
  0x1f   : > { %p723_p12 = scmp.ne.s32.totalorder %s946_s12, %s722_s21  ;;  %p730_p2 = scmp.lt.s32.totalorder %s728_s24, %s722_s21 }
  0x21   : > { %642 = vmatmul.mubr.msk.f32.gmra.mrb[2].mxu0 %vm308_vm0, %v283_v10  ;;  %p724_p13 = pnand %p723_p12, %p877_p4  ;;  %p731_p3 = por %p730_p2, %p729_p1 }
  0x23   : > { %p725_p0 = pneg %p724_p13 }
  0x25   : > { %p732_p5 = pnand %p731_p3, %p725_p0 }
  0x8f   : > { %v291_v13 = vpop.permute.xlu0 %290 }
  0x90   : > { %v301_v14 = vpop.permute.xlu1 %300 }
  0x93   : > { %v296_v15 = vpop.permute.xlu0 %295 }
  0x94   : > { %v306_v21 = vpop.permute.xlu1 %305 }
  0x9b   : > { %v419_v32 = vpop.permute.xlu0 %418 }
  0xf0   : > { %v640_v16 = vpop.f32.mrb[0].mxu0 }
  0xf1   : > { %v397_v17 = vadd.f32 %v640_v16, %v296_v15  ;;  %v391_v18 = vpop.f32.mrb[1].mxu0 }
  0xf2   : > { %v392_v19 = vadd.f32 %v391_v18, %v291_v13 }
  0xf3   : > { %v411_v20 = vmax.f32 %v397_v17, 0.0 }
  0xf4   : > { %v410_v22 = vmax.f32 %v392_v19, 0.0  ;;  %v643_v23 = vpop.f32.mrb[2].mxu0 }
  0xf5   : > { %v407_v24 = vadd.f32 %v643_v23, %v306_v21  ;;  %v401_v25 = vpop.f32.mrb[3].mxu0 }
  0xf6   : > { %v402_v26 = vadd.f32 %v401_v25, %v301_v14  ;;  %v656_v27 = vpack.c.bf16 %v411_v20, %v410_v22 }
  0xf7   : > { %v413_v28 = vmax.f32 %v407_v24, 0.0 }
  0xf8   : > { %v412_v29 = vmax.f32 %v402_v26, 0.0  ;;  %657 = vmatpush3.bf16.msra.mxu1 %v656_v27 }
  0xf9   : > { %658 = vmatprep.subr.bf16.mxu1 %v803_v11 }
  0xfa   : > { %v659_v30 = vpack.c.bf16 %v413_v28, %v412_v29 }
  0xfc   : > { %660 = vmatpush3.bf16.msra.mxu1 %v659_v30 }
  0xff   : > { %653 = vmatmul.mubr.msk.f32.vlgmr.msra.gmra.mrb[0].mxu1 %vm421_vm3, %v414_v31 }
 0x1d2   : > { %v491_v33 = vpop.f32.mrb[0].mxu1 }
 0x1d3   : > { %v492_v34 = vadd.f32 %v491_v33, %v419_v32  ;;  %v654_v35 = vpop.f32.mrb[1].mxu1 }
 0x1d5   : > { %496 = vst.msk [vmem:[%s263_s10] sm:$0x3] %vm495_vm4, %v492_v34 }
 0x1d6   : > { %735 = shalt.err (!%p732_p5)
}
 0x1d7   : > { %s736_s25 = scalar_lea.hbm %s944_s17, 32  ;;  %s740_s7 = scalar_lea.hbm %s996_s5, 64 }
 0x1d8   : > { %p737_p6 = scmp.ne.s32.totalorder %s944_s17, %s736_s25  ;;  %p741_p10 = scmp.lt.u32.totalorder %s944_s17, %s996_s5 }
 0x1d9   : > { %p742_p11 = scmp.lt.u32.totalorder %s740_s7, %s736_s25  ;;  %p744_p13 = scmp.lt.u32.totalorder %s736_s25, %s944_s17 }
 0x1da   : > { %p738_p7 = pnand %p737_p6, %p877_p4 }
 0x1db   : > { %p743_p12 = por %p742_p11, %p741_p10 }
 0x1dc   : > { %p739_p9 = pneg %p738_p7 }
 0x1dd   : > { %p745_p0 = por %p744_p13, %p743_p12 }
 0x1df   : > { %p746_p1 = pnand %p745_p0, %p739_p9 }
 0x1e1   : > { %749 = shalt.err (!%p746_p1)
}
 0x1e2   : > { %661 = dma.vmem_to_hbm [thread:$0]  (%p877_p4), %s946_s12, 32, %s944_s17, %s498_s15  }
 0x1e3 PF: > { %p667_p2 = scmp.ge.s32.totalorder %s800_s23, 2  ;;  %s524_s10 = sand.u32 1, %s780_s18  }
 0x1e4   : > { %s525_s11 = scalar_lea.sflag [#allocation3], %s524_s10 }
 0x1e5   : > { %p664_p3 = pnand %p667_p2, %p884_p8 }
 0x1e7   : > { %775 = dma.done.wait (!%p664_p3), %s525_s11, 32  }
 0x1e8   : > { %777 = vsyncadd (!%p664_p3), %s525_s11, 4294967264  ;;  %s18_s23 = sadd.s32 1, %s800_s23   ;;  %s999_s18 = smov %s784_s19 }
 0x1e9   : > { %p15_p5 = scmp.ge.s32.totalorder %s18_s23, 4   ;;  %s1000_s19 = smov %s788_s20 }
 0x1ea   : > { %s1001_s20 = smov %s890_s6  ;;  %s1002_s21 = smov %s796_s22 }
 0x1eb   : > { %s1003_s22 = smov %s1005_s26  ;;  %17 = sbr.rel (!%p15_p5) target bundleno = 4 (0x4), region = 81 }
 0x1f2   :  { %530 = vsyncpa [#allocation3], 1 }
 0x1f3   :  { %532 = vsyncpa [#allocation3 + $0x1], 1 }

</bundles_post_ra>
